<compile_context>
chip_gen: v6e
topology: v6e:2x2x1
jax: 0.10.0
libtpu: 0.0.40
codegen_flags: <defaults>
</compile_context>

<pallas_src>
import jax
import jax.numpy as jnp
from jax.experimental import pallas as pl
from jax.experimental.pallas import tpu as pltpu


def _softplus(x):
    # numerically stable softplus (VPU + EUP ops only)
    return jnp.maximum(x, 0.0) + jnp.log1p(jnp.exp(-jnp.abs(x)))


def _nn_c_fused_kernel(x_ref, *refs):
    """Fused layer stack.

    refs = (w0, b0, w1, b1, ..., wL-1, bL-1, out_ref)
      wi : (2*D_in, 2*D_out) stacked complex weight [[Wr, Wi], [-Wi, Wr]]
      bi : (1, 2*D_out)      stacked bias           [br | bi]
    x_ref : (B, 2*D_in) stacked input [xr | xi]
    out_ref : (B, 2*D_out_last) stacked output [softplus(yr) | softplus(yi)]
    """
    out_ref = refs[-1]
    wb_refs = refs[:-1]
    n_layers = len(wb_refs) // 2

    h = x_ref[...]  # activations stay on-chip for the whole stack
    for li in range(n_layers):  # unrolled at trace time (static layer count)
        w = wb_refs[2 * li][...]
        b = wb_refs[2 * li + 1][...]
        # one MXU matmul per complex layer (f32 accumulation), bias folded in
        y = jnp.dot(h, w, preferred_element_type=jnp.float32) + b
        # CSplitSoftplus acts independently on real/imag halves of the slab
        h = _softplus(y)
    out_ref[...] = h


def _nn_c_fused(xs, stacked_wb, out_dim2):
    B = xs.shape[0]
    vmem = pl.BlockSpec(memory_space=pltpu.MemorySpace.VMEM)
    return pl.pallas_call(
        _nn_c_fused_kernel,
        out_shape=jax.ShapeDtypeStruct((B, out_dim2), jnp.float32),
        in_specs=[vmem] * (1 + len(stacked_wb)),
        out_specs=vmem,
    )(xs, *stacked_wb)


@jax.jit
def nn_c_forward(params, x_complex):
    """params: list of (wr, wi, br, bi); x_complex: complex64 (B, in_dim)."""
    xr = jnp.real(x_complex).astype(jnp.float32)
    xi = jnp.imag(x_complex).astype(jnp.float32)
    xs = jnp.concatenate([xr, xi], axis=1)  # (B, 2*in_dim)

    # build the stacked real-valued weights/biases once, outside the kernel
    stacked = []
    for (wr, wi, br, bi) in params:
        w_s = jnp.concatenate(
            [jnp.concatenate([wr, wi], axis=1),
             jnp.concatenate([-wi, wr], axis=1)], axis=0)  # (2*d_in, 2*d_out)
        b_s = jnp.concatenate([br, bi], axis=1)            # (1, 2*d_out)
        stacked.extend([w_s, b_s])

    d_out = params[-1][0].shape[1]
    out = _nn_c_fused(xs, stacked, 2 * d_out)
    return jax.lax.complex(out[:, :d_out], out[:, d_out:])


def init_nn_c_params(key, in_dim, n_hid, out_dim, num_hid_layers):
    """Deterministic parameter init for the layer stack.

    Layer dims: in_dim -> n_hid -> (n_hid)*num_hid_layers -> out_dim.
    Weights stored as (D_in, D_out) real/imag pairs; biases as (1, D_out).
    `rayleigh_init` emulated with Rayleigh magnitude + uniform phase,
    scaled by 1/sqrt(D_in) (coeff = 1.0).
    """
    dims = [in_dim] + [n_hid] * (num_hid_layers + 1) + [out_dim]
    params = []
    for li in range(len(dims) - 1):
        d_in, d_out = dims[li], dims[li + 1]
        key, k_mag, k_ph = jax.random.split(key, 3)
        u = jax.random.uniform(k_mag, (d_in, d_out), jnp.float32,
                               minval=1e-6, maxval=1.0)
        mag = jnp.sqrt(-2.0 * jnp.log(u)) / jnp.sqrt(jnp.float32(d_in))
        phase = jax.random.uniform(k_ph, (d_in, d_out), jnp.float32,
                                   minval=0.0, maxval=2.0 * jnp.pi)
        wr = mag * jnp.cos(phase)
        wi = mag * jnp.sin(phase)
        br = jnp.zeros((1, d_out), jnp.float32)
        bi = jnp.zeros((1, d_out), jnp.float32)
        params.append((wr, wi, br, bi))
    return params


if __name__ == "__main__":
    # small shapes consistent with the module
    B, in_dim, n_hid, out_dim, num_hid_layers = 8, 16, 32, 8, 2

    key = jax.random.PRNGKey(0)
    key, kx_r, kx_i = jax.random.split(key, 3)
    x = (jax.random.normal(kx_r, (B, in_dim), jnp.float32)
         + 1j * jax.random.normal(kx_i, (B, in_dim), jnp.float32)
         ).astype(jnp.complex64)

    params = init_nn_c_params(key, in_dim, n_hid, out_dim, num_hid_layers)

    out = jax.block_until_ready(nn_c_forward(params, x))

    # pure-JAX reference: per-layer 4-matmul complex expansion + split softplus
    def ref_forward(params, xc):
        xr = jnp.real(xc).astype(jnp.float32)
        xi = jnp.imag(xc).astype(jnp.float32)
        for (wr, wi, br, bi) in params:
            yr = xr @ wr - xi @ wi + br
            yi = xr @ wi + xi @ wr + bi
            xr, xi = jax.nn.softplus(yr), jax.nn.softplus(yi)
        return xr + 1j * xi

    ref = jax.block_until_ready(ref_forward(params, x))

    assert out.shape == (B, out_dim), out.shape
    assert out.dtype == jnp.complex64, out.dtype
    assert jnp.allclose(jnp.real(out), jnp.real(ref), atol=1e-5, rtol=1e-5)
    assert jnp.allclose(jnp.imag(out), jnp.imag(ref), atol=1e-5, rtol=1e-5)
    # softplus output is strictly positive in both components
    assert bool(jnp.all(jnp.real(out) > 0)) and bool(jnp.all(jnp.imag(out) > 0))

    print("KERNEL_OK")
</pallas_src>

<mosaic_0001>
module attributes {stable_mosaic.version = 11 : i64} {
  func.func @_nn_c_fused_kernel(%arg0: memref<8x32xf32, #tpu.memory_space<vmem>>, %arg1: memref<32x64xf32, #tpu.memory_space<vmem>>, %arg2: memref<1x64xf32, #tpu.memory_space<vmem>>, %arg3: memref<64x64xf32, #tpu.memory_space<vmem>>, %arg4: memref<1x64xf32, #tpu.memory_space<vmem>>, %arg5: memref<64x64xf32, #tpu.memory_space<vmem>>, %arg6: memref<1x64xf32, #tpu.memory_space<vmem>>, %arg7: memref<64x16xf32, #tpu.memory_space<vmem>>, %arg8: memref<1x16xf32, #tpu.memory_space<vmem>>, %arg9: memref<8x16xf32, #tpu.memory_space<vmem>>) attributes {dimension_semantics = [], scalar_prefetch = 0 : i64, scratch_operands = 0 : i64, tpu.core_type = #tpu.core_type<tc>} {
    %c0 = arith.constant 0 : index
    %c0_0 = arith.constant 0 : index
    %0 = vector.load %arg0[%c0, %c0_0] : memref<8x32xf32, #tpu.memory_space<vmem>>, vector<8x32xf32>
    %c0_1 = arith.constant 0 : index
    %c0_2 = arith.constant 0 : index
    %1 = vector.load %arg1[%c0_1, %c0_2] : memref<32x64xf32, #tpu.memory_space<vmem>>, vector<32x64xf32>
    %c0_3 = arith.constant 0 : index
    %c0_4 = arith.constant 0 : index
    %2 = vector.load %arg2[%c0_3, %c0_4] : memref<1x64xf32, #tpu.memory_space<vmem>>, vector<1x64xf32>
    %cst = arith.constant dense<0.000000e+00> : vector<8x64xf32>
    %3 = tpu.matmul %0, %1, %cst {dimension_numbers = #tpu.dot_dimension_numbers<[1], [0], [0], [1], [0, 0, 1, 1], [], []>} : vector<8x32xf32>, vector<32x64xf32>, vector<8x64xf32> -> vector<8x64xf32>
    %4 = vector.broadcast %2 : vector<1x64xf32> to vector<8x64xf32>
    %5 = arith.addf %3, %4 : vector<8x64xf32>
    %cst_5 = arith.constant 0.000000e+00 : f32
    %6 = vector.broadcast %cst_5 : f32 to vector<8x64xf32>
    %7 = arith.maximumf %5, %6 : vector<8x64xf32>
    %8 = math.absf %5 : vector<8x64xf32>
    %cst_6 = arith.constant 0.000000e+00 : f32
    %9 = vector.broadcast %cst_6 : f32 to vector<8x64xf32>
    %10 = arith.subf %9, %8 : vector<8x64xf32>
    %11 = math.exp %10 : vector<8x64xf32>
    %12 = math.log1p %11 : vector<8x64xf32>
    %13 = arith.addf %7, %12 : vector<8x64xf32>
    %c0_7 = arith.constant 0 : index
    %c0_8 = arith.constant 0 : index
    %14 = vector.load %arg3[%c0_7, %c0_8] : memref<64x64xf32, #tpu.memory_space<vmem>>, vector<64x64xf32>
    %c0_9 = arith.constant 0 : index
    %c0_10 = arith.constant 0 : index
    %15 = vector.load %arg4[%c0_9, %c0_10] : memref<1x64xf32, #tpu.memory_space<vmem>>, vector<1x64xf32>
    %cst_11 = arith.constant dense<0.000000e+00> : vector<8x64xf32>
    %16 = tpu.matmul %13, %14, %cst_11 {dimension_numbers = #tpu.dot_dimension_numbers<[1], [0], [0], [1], [0, 0, 1, 1], [], []>} : vector<8x64xf32>, vector<64x64xf32>, vector<8x64xf32> -> vector<8x64xf32>
    %17 = vector.broadcast %15 : vector<1x64xf32> to vector<8x64xf32>
    %18 = arith.addf %16, %17 : vector<8x64xf32>
    %cst_12 = arith.constant 0.000000e+00 : f32
    %19 = vector.broadcast %cst_12 : f32 to vector<8x64xf32>
    %20 = arith.maximumf %18, %19 : vector<8x64xf32>
    %21 = math.absf %18 : vector<8x64xf32>
    %cst_13 = arith.constant 0.000000e+00 : f32
    %22 = vector.broadcast %cst_13 : f32 to vector<8x64xf32>
    %23 = arith.subf %22, %21 : vector<8x64xf32>
    %24 = math.exp %23 : vector<8x64xf32>
    %25 = math.log1p %24 : vector<8x64xf32>
    %26 = arith.addf %20, %25 : vector<8x64xf32>
    %c0_14 = arith.constant 0 : index
    %c0_15 = arith.constant 0 : index
    %27 = vector.load %arg5[%c0_14, %c0_15] : memref<64x64xf32, #tpu.memory_space<vmem>>, vector<64x64xf32>
    %c0_16 = arith.constant 0 : index
    %c0_17 = arith.constant 0 : index
    %28 = vector.load %arg6[%c0_16, %c0_17] : memref<1x64xf32, #tpu.memory_space<vmem>>, vector<1x64xf32>
    %cst_18 = arith.constant dense<0.000000e+00> : vector<8x64xf32>
    %29 = tpu.matmul %26, %27, %cst_18 {dimension_numbers = #tpu.dot_dimension_numbers<[1], [0], [0], [1], [0, 0, 1, 1], [], []>} : vector<8x64xf32>, vector<64x64xf32>, vector<8x64xf32> -> vector<8x64xf32>
    %30 = vector.broadcast %28 : vector<1x64xf32> to vector<8x64xf32>
    %31 = arith.addf %29, %30 : vector<8x64xf32>
    %cst_19 = arith.constant 0.000000e+00 : f32
    %32 = vector.broadcast %cst_19 : f32 to vector<8x64xf32>
    %33 = arith.maximumf %31, %32 : vector<8x64xf32>
    %34 = math.absf %31 : vector<8x64xf32>
    %cst_20 = arith.constant 0.000000e+00 : f32
    %35 = vector.broadcast %cst_20 : f32 to vector<8x64xf32>
    %36 = arith.subf %35, %34 : vector<8x64xf32>
    %37 = math.exp %36 : vector<8x64xf32>
    %38 = math.log1p %37 : vector<8x64xf32>
    %39 = arith.addf %33, %38 : vector<8x64xf32>
    %c0_21 = arith.constant 0 : index
    %c0_22 = arith.constant 0 : index
    %40 = vector.load %arg7[%c0_21, %c0_22] : memref<64x16xf32, #tpu.memory_space<vmem>>, vector<64x16xf32>
    %c0_23 = arith.constant 0 : index
    %c0_24 = arith.constant 0 : index
    %41 = vector.load %arg8[%c0_23, %c0_24] : memref<1x16xf32, #tpu.memory_space<vmem>>, vector<1x16xf32>
    %cst_25 = arith.constant dense<0.000000e+00> : vector<8x16xf32>
    %42 = tpu.matmul %39, %40, %cst_25 {dimension_numbers = #tpu.dot_dimension_numbers<[1], [0], [0], [1], [0, 0, 1, 1], [], []>} : vector<8x64xf32>, vector<64x16xf32>, vector<8x16xf32> -> vector<8x16xf32>
    %43 = vector.broadcast %41 : vector<1x16xf32> to vector<8x16xf32>
    %44 = arith.addf %42, %43 : vector<8x16xf32>
    %cst_26 = arith.constant 0.000000e+00 : f32
    %45 = vector.broadcast %cst_26 : f32 to vector<8x16xf32>
    %46 = arith.maximumf %44, %45 : vector<8x16xf32>
    %47 = math.absf %44 : vector<8x16xf32>
    %cst_27 = arith.constant 0.000000e+00 : f32
    %48 = vector.broadcast %cst_27 : f32 to vector<8x16xf32>
    %49 = arith.subf %48, %47 : vector<8x16xf32>
    %50 = math.exp %49 : vector<8x16xf32>
    %51 = math.log1p %50 : vector<8x16xf32>
    %52 = arith.addf %46, %51 : vector<8x16xf32>
    %c0_28 = arith.constant 0 : index
    %c0_29 = arith.constant 0 : index
    %53 = vector.load %arg9[%c0_28, %c0_29] : memref<8x16xf32, #tpu.memory_space<vmem>>, vector<8x16xf32>
    tpu.vector_store %arg9[%c0_28, %c0_29], %52 {strides = array<i32>} : memref<8x16xf32, #tpu.memory_space<vmem>>, vector<8x16xf32>,
    return
  }
}

</mosaic_0001>

<bundles_post_ra>
// kernel: neg.6
= control target key start
LH: loop header
LB: loop body
LE: loop exit
PB: predicated region body
PF: predicated region fallthrough
CT: control target
= control target key end

     0   :  { %s72_s0 = inlined_call_operand.vmem [shape: f32[32,32], index: 0, kind: input, shape index: {}]   ;;  %s73_s1 = inlined_call_operand.vmem [shape: f32[32,32], index: 1, kind: output, shape index: {}]  }
   0x1   :  { %v2_v0 = vld [vmem:[%s72_s0] sm:$0xff]  ;;  %v32_v1 = vld [vmem:[%s72_s0 + $0x8] sm:$0xff]  ;;  %v34_v2 = vld [vmem:[%s72_s0 + $0x10] sm:$0xff] }
   0x2   :  { %v5_v3 = vxor.u32 2147483648, %v2_v0  ;;  %v12_v4 = vxor.u32 2147483648, %v32_v1  ;;  %v20_v5 = vxor.u32 2147483648, %v34_v2  ;;  %v36_v6 = vld [vmem:[%s72_s0 + $0x18] sm:$0xff] }
   0x3   :  { %v28_v7 = vxor.u32 2147483648, %v36_v6 }
   0x4   :  { %7 = vst [vmem:[%s73_s1] sm:$0xff] %v5_v3  ;;  %33 = vst [vmem:[%s73_s1 + $0x8] sm:$0xff] %v12_v4 }
   0x5   :  { %35 = vst [vmem:[%s73_s1 + $0x10] sm:$0xff] %v20_v5  ;;  %37 = vst [vmem:[%s73_s1 + $0x18] sm:$0xff] %v28_v7 }

// kernel: neg.5
= control target key start
LH: loop header
LB: loop body
LE: loop exit
PB: predicated region body
PF: predicated region fallthrough
CT: control target
= control target key end

     0   :  { %2 = vsyncpa [#allocation1], 0  ;;  %s73_s6 = smov [#allocation0]   ;;  %s101_s0 = inlined_call_operand.hbm [shape: f32[32,32], index: 0, kind: input, shape index: {}]   ;;  %s102_s1 = inlined_call_operand.vmem [shape: f32[32,32], index: 1, kind: output, shape index: {}]  }
   0x1   :  { %s6_s7 = sshll.u32 %s73_s6, 4  ;;  %s7_s7 = int_to_ptr.vmem [resolvable:$true] %s6_s7 }
   0x2   :  { %s59_s8 = scalar_lea.vmem %s7_s7, 512  ;;  %p64_p1 = scmp.lt.s32.totalorder %s7_s7, %s7_s7 }
   0x3   :  { %p60_p0 = scmp.ne.s32.totalorder %s7_s7, %s59_s8  ;;  %p65_p2 = scmp.lt.s32.totalorder %s59_s8, %s59_s8 }
   0x5   :  { %p66_p3 = por %p65_p2, %p64_p1 }
   0x7   :  { %p67_p4 = pnand %p66_p3, %p60_p0 }
   0x9   :  { %70 = shalt.err (!%p67_p4)
}
   0xa   :  { %s74_s9 = smov 128   ;;  %s75_s10 = smov 8  }
   0xb   :  { %12 = dma.hbm_to_vmem [thread:$0]  %s101_s0, 512, %s7_s7, [#allocation1], %s74_s9, %s74_s9, %s75_s10  }
   0xc   :  { %71 = dma.done.wait [#allocation1], 512  }
   0xd   :  { %72 = vsyncadd [#allocation1], 4294966784  ;;  %v14_v0 = vld [vmem:[#allocation0] sm:$0xff]  ;;  %v21_v1 = vld [vmem:[#allocation0 + $0x8] sm:$0xff] }
   0xe   :  { %v29_v2 = vld [vmem:[#allocation0 + $0x10] sm:$0xff]  ;;  %v17_v3 = vxor.u32 2147483648, %v14_v0  ;;  %v24_v4 = vxor.u32 2147483648, %v21_v1  ;;  %v37_v6 = vld [vmem:[#allocation0 + $0x18] sm:$0xff] }
   0xf   :  { %v32_v5 = vxor.u32 2147483648, %v29_v2  ;;  %v40_v7 = vxor.u32 2147483648, %v37_v6 }
  0x10   :  { %19 = vst [vmem:[%s102_s1] sm:$0xff] %v17_v3  ;;  %45 = vst [vmem:[%s102_s1 + $0x8] sm:$0xff] %v24_v4 }
  0x11   :  { %46 = vst [vmem:[%s102_s1 + $0x10] sm:$0xff] %v32_v5  ;;  %47 = vst [vmem:[%s102_s1 + $0x18] sm:$0xff] %v40_v7 }
  0x12   :  { %44 = vsyncpa [#allocation1], 1 }

// kernel: neg.7
= control target key start
LH: loop header
LB: loop body
LE: loop exit
PB: predicated region body
PF: predicated region fallthrough
CT: control target
= control target key end

     0   :  { %s24_s0 = inlined_call_operand.vmem [shape: f32[32,8], index: 0, kind: input, shape index: {}]   ;;  %s25_s1 = inlined_call_operand.vmem [shape: f32[32,8], index: 1, kind: output, shape index: {}]  }
   0x1   :  { %v2_v0 = vld [vmem:[%s24_s0] sm:$0xff] }
   0x2   :  { %v5_v1 = vxor.u32 2147483648, %v2_v0 }
   0x4   :  { %7 = vst [vmem:[%s25_s1] sm:$0xff] %v5_v1 }

// kernel: neg.4
= control target key start
LH: loop header
LB: loop body
LE: loop exit
PB: predicated region body
PF: predicated region fallthrough
CT: control target
= control target key end

     0   :  { %s40_s0 = inlined_call_operand.vmem [shape: f32[16,32], index: 0, kind: input, shape index: {}]   ;;  %s41_s1 = inlined_call_operand.vmem [shape: f32[16,32], index: 1, kind: output, shape index: {}]  }
   0x1   :  { %v2_v0 = vld [vmem:[%s40_s0] sm:$0xff]  ;;  %v16_v1 = vld [vmem:[%s40_s0 + $0x8] sm:$0xff] }
   0x2   :  { %v5_v2 = vxor.u32 2147483648, %v2_v0  ;;  %v12_v3 = vxor.u32 2147483648, %v16_v1 }
   0x4   :  { %7 = vst [vmem:[%s41_s1] sm:$0xff] %v5_v2  ;;  %17 = vst [vmem:[%s41_s1 + $0x8] sm:$0xff] %v12_v3 }

// kernel: custom-call
= control target key start
LH: loop header
LB: loop body
LE: loop exit
PB: predicated region body
PF: predicated region fallthrough
CT: control target
= control target key end

     0   :  { %2 = vsyncpa [#allocation0], 0  ;;  %s47_s0 = inlined_call_operand.hbm [shape: c64[8,16], index: 0, kind: input, shape index: {}]   ;;  %s48_s1 = inlined_call_operand.vmem [shape: f32[8,16], index: 1, kind: output, shape index: {}]  }
   0x1   :  { %s3_s8 = sshll.u32 %s48_s1, 4  ;;  %s4_s8 = int_to_ptr.vmem [resolvable:$true] %s3_s8 }
   0x2   :  { %s17_s9 = scalar_lea.vmem %s4_s8, 128  ;;  %p22_p1 = scmp.lt.s32.totalorder %s4_s8, %s4_s8 }
   0x3   :  { %p18_p0 = scmp.ne.s32.totalorder %s4_s8, %s17_s9  ;;  %p23_p2 = scmp.lt.s32.totalorder %s17_s9, %s17_s9 }
   0x5   :  { %p24_p3 = por %p23_p2, %p22_p1 }
   0x7   :  { %p25_p4 = pnand %p24_p3, %p18_p0 }
   0x9   :  { %28 = shalt.err (!%p25_p4)  }
   0xa   :  { %6 = dma.hbm_to_vmem [thread:$0]  %s47_s0, 128, %s4_s8, [#allocation0] }
   0xb   :  { %29 = dma.done.wait [#allocation0], 128  }
   0xc   :  { %30 = vsyncadd [#allocation0], 4294967168 }
   0xd   :  { %8 = vsyncpa [#allocation0], 1 }

// kernel: custom-call.1
= control target key start
LH: loop header
LB: loop body
LE: loop exit
PB: predicated region body
PF: predicated region fallthrough
CT: control target
= control target key end

     0   :  { %s51_s0 = inlined_call_operand.hbm [shape: c64[8,16], index: 0, kind: input, shape index: {}]   ;;  %s52_s1 = inlined_call_operand.vmem [shape: f32[8,16], index: 1, kind: output, shape index: {}]  }
   0x1   :  { %s2_s8 = scalar_lea.hbm %s51_s0, 128 }
   0x2   :  { %3 = vsyncpa [#allocation0], 0  ;;  %s4_s11 = sshll.u32 %s52_s1, 4  ;;  %s5_s11 = int_to_ptr.vmem [resolvable:$true] %s4_s11 }
   0x3   :  { %s20_s12 = scalar_lea.vmem %s5_s11, 128  ;;  %p25_p1 = scmp.lt.s32.totalorder %s5_s11, %s5_s11 }
   0x4   :  { %p21_p0 = scmp.ne.s32.totalorder %s5_s11, %s20_s12  ;;  %p26_p2 = scmp.lt.s32.totalorder %s20_s12, %s20_s12 }
   0x6   :  { %p27_p3 = por %p26_p2, %p25_p1 }
   0x8   :  { %p28_p4 = pnand %p27_p3, %p21_p0 }
   0xa   :  { %31 = shalt.err (!%p28_p4)  }
   0xb   :  { %7 = dma.hbm_to_vmem [thread:$0]  %s2_s8, 128, %s5_s11, [#allocation0] }
   0xc   :  { %33 = dma.done.wait [#allocation0], 128  }
   0xd   :  { %34 = vsyncadd [#allocation0], 4294967168 }
   0xe   :  { %9 = vsyncpa [#allocation0], 1 }

// kernel: custom-call.2
= control target key start
LH: loop header
LB: loop body
LE: loop exit
PB: predicated region body
PF: predicated region fallthrough
CT: control target
= control target key end

     0   :  { %s92_s0 = inlined_call_operand.vmem [shape: f32[8,8], index: 0, kind: input, shape index: {}]   ;;  %s93_s1 = inlined_call_operand.vmem [shape: f32[8,8], index: 1, kind: input, shape index: {}]   ;;  %s94_s2 = inlined_call_operand.hbm [shape: c64[8,8], index: 2, kind: output, shape index: {}]  }
   0x1   :  { %s3_s11 = scalar_lea.hbm %s94_s2, 128 }
   0x2   :  { %4 = vsyncpa [#allocation0], 0  ;;  %s5_s14 = sshll.u32 %s92_s0, 4  ;;  %s6_s14 = int_to_ptr.vmem [resolvable:$true] %s5_s14 }
   0x3   :  { %s18_s15 = scalar_lea.vmem %s6_s14, 128  ;;  %p23_p1 = scmp.lt.s32.totalorder %s6_s14, %s6_s14 }
   0x4   :  { %p19_p0 = scmp.ne.s32.totalorder %s6_s14, %s18_s15  ;;  %p24_p2 = scmp.lt.s32.totalorder %s18_s15, %s18_s15 }
   0x6   :  { %p25_p3 = por %p24_p2, %p23_p1 }
   0x8   :  { %p26_p4 = pnand %p25_p3, %p19_p0 }
   0xa   :  { %29 = shalt.err (!%p26_p4)  }
   0xb   :  { %8 = dma.vmem_to_hbm [thread:$0]  %s6_s14, 128, %s94_s2, [#allocation0] }
   0xc   :  { %61 = dma.done.wait [#allocation0], 128  }
   0xd   :  { %62 = vsyncadd [#allocation0], 4294967168 }
   0xe   :  { %10 = vsyncpa [#allocation0], 1 }
   0xf   :  { %11 = vsyncpa [#allocation1], 0  ;;  %s12_s0 = sshll.u32 %s93_s1, 4  ;;  %s13_s0 = int_to_ptr.vmem [resolvable:$true] %s12_s0 }
  0x10   :  { %s38_s20 = scalar_lea.vmem %s13_s0, 128  ;;  %p43_p6 = scmp.lt.s32.totalorder %s13_s0, %s13_s0 }
  0x11   :  { %p39_p5 = scmp.ne.s32.totalorder %s13_s0, %s38_s20  ;;  %p44_p7 = scmp.lt.s32.totalorder %s38_s20, %s38_s20 }
  0x13   :  { %p45_p8 = por %p44_p7, %p43_p6 }
  0x15   :  { %p46_p9 = pnand %p45_p8, %p39_p5 }
  0x17   :  { %49 = shalt.err (!%p46_p9)  }
  0x18   :  { %15 = dma.vmem_to_hbm [thread:$0]  %s13_s0, 128, %s3_s11, [#allocation1] }
  0x19   :  { %63 = dma.done.wait [#allocation1], 128  }
  0x1a   :  { %64 = vsyncadd [#allocation1], 4294967168 }
  0x1b   :  { %17 = vsyncpa [#allocation1], 1 }

// kernel: nn_c_forward.1
= control target key start
LH: loop header
LB: loop body
LE: loop exit
PB: predicated region body
PF: predicated region fallthrough
CT: control target
= control target key end

     0   :  { %v575_v0 = vmov 0.0   ;;  %vm576_vm0 = vmmov 0   ;;  %vm44_vm1 = vcmask 261120   ;;  %vm148_vm3 = vcmask 523264   ;;  %s768_s1 = inlined_call_operand.vmem [shape: f32[32,64], index: 1, kind: input, shape index: {}]   ;;  %s769_s0 = inlined_call_operand.vmem [shape: f32[8,32], index: 0, kind: input, shape index: {}]   ;;  %s770_s3 = inlined_call_operand.vmem [shape: f32[64,64], index: 3, kind: input, shape index: {}]   ;;  %s771_s2 = inlined_call_operand.vmem [shape: f32[1,64], index: 2, kind: input, shape index: {}]   ;;  %s772_s5 = inlined_call_operand.vmem [shape: f32[64,64], index: 5, kind: input, shape index: {}]   ;;  %s773_s4 = inlined_call_operand.vmem [shape: f32[1,64], index: 4, kind: input, shape index: {}]   ;;  %s774_s7 = inlined_call_operand.vmem [shape: f32[64,16], index: 7, kind: input, shape index: {}]   ;;  %s775_s6 = inlined_call_operand.vmem [shape: f32[1,64], index: 6, kind: input, shape index: {}]   ;;  %s776_s8 = inlined_call_operand.vmem [shape: f32[1,16], index: 8, kind: input, shape index: {}]   ;;  %s777_s9 = inlined_call_operand.vmem [shape: f32[8,16], index: 9, kind: output, shape index: {}]  }
   0x1   :  { %489 = vmatprep.subr.mxu0 %v575_v0  ;;  %v36_v1 = vld [vmem:[%s768_s1 + $0x18] sm:$0xff]  ;;  %v35_v2 = vld [vmem:[%s768_s1 + $0x10] sm:$0xff]  ;;  %497 = vmatprep.mubr.msk.f32.mxu0 %vm576_vm0, %v575_v0  ;;  %v34_v3 = vld [vmem:[%s768_s1 + $0x8] sm:$0xff]  ;;  %vm443_vm7 = vcmask 130048  }
   0x2   :  { %490 = vmatpush3.msra.mxu0 %v36_v1  ;;  %500 = vmatprep.subr.mxu1 %v575_v0  ;;  %v33_v4 = vld [vmem:[%s768_s1] sm:$0xff]  ;;  %v140_v6 = vld [vmem:[%s770_s3 + $0x38] sm:$0xff]  ;;  %v139_v7 = vld [vmem:[%s770_s3 + $0x30] sm:$0xff] }
   0x3   :  { %491 = vmatprep.subr.mxu0 %v575_v0  ;;  %516 = vmatprep.mubr.msk.f32.mxu1 %vm576_vm0, %v575_v0  ;;  %v32_v5 = vld [vmem:[%s769_s0] sm:$0xff]  ;;  %v138_v8 = vld [vmem:[%s770_s3 + $0x28] sm:$0xff]  ;;  %v136_v10 = vld [vmem:[%s770_s3 + $0x18] sm:$0xff] }
   0x4   :  { %492 = vmatpush3.msra.mxu0 %v35_v2  ;;  %501 = vmatpush3.msra.mxu1 %v140_v6  ;;  %v137_v9 = vld [vmem:[%s770_s3 + $0x20] sm:$0xff]  ;;  %v135_v11 = vld [vmem:[%s770_s3 + $0x10] sm:$0xff]  ;;  %v134_v12 = vld [vmem:[%s770_s3 + $0x8] sm:$0xff] }
   0x5   :  { %493 = vmatprep.subr.mxu0 %v575_v0  ;;  %502 = vmatprep.subr.mxu1 %v575_v0  ;;  %v133_v13 = vld [vmem:[%s770_s3] sm:$0xff]  ;;  %v244_v32 = vld [vmem:[%s772_s5 + $0x38] sm:$0xff]  ;;  %v243_v33 = vld [vmem:[%s772_s5 + $0x30] sm:$0xff] }
   0x6   :  { %494 = vmatpush3.msra.mxu0 %v34_v3  ;;  %503 = vmatpush3.msra.mxu1 %v139_v7  ;;  %v449_v14 = vld [vmem:[%s771_s2] ss:$0 sm:$0xff]  ;;  %v242_v34 = vld [vmem:[%s772_s5 + $0x28] sm:$0xff]  ;;  %v240_v36 = vld [vmem:[%s772_s5 + $0x18] sm:$0xff] }
   0x7   :  { %495 = vmatprep.subr.mxu0 %v575_v0  ;;  %504 = vmatprep.subr.mxu1 %v575_v0  ;;  %v241_v35 = vld [vmem:[%s772_s5 + $0x20] sm:$0xff]  ;;  %v239_v37 = vld [vmem:[%s772_s5 + $0x10] sm:$0xff]  ;;  %v238_v38 = vld [vmem:[%s772_s5 + $0x8] sm:$0xff] }
   0x8   :  { %496 = vmatpush3.msra.mxu0 %v33_v4  ;;  %505 = vmatpush3.msra.mxu1 %v138_v8  ;;  %v237_v39 = vld [vmem:[%s772_s5] sm:$0xff]  ;;  %v347_v58 = vld [vmem:[%s774_s7 + $0x38] sm:$0xff]  ;;  %v346_v59 = vld [vmem:[%s774_s7 + $0x30] sm:$0xff] }
   0x9   :  { %498 = vmatmul.mubr.msk.f32.vlgmr.msra.gmra.mxu0 %vm44_vm1, %v32_v5  ;;  %519 = vmatprep.subr.mxu0 %v575_v0  ;;  %v451_v40 = vld [vmem:[%s773_s4] ss:$0 sm:$0xff]  ;;  %v345_v60 = vld [vmem:[%s774_s7 + $0x28] sm:$0xff]  ;;  %v343_v62 = vld [vmem:[%s774_s7 + $0x18] sm:$0xff] }
   0xa   :  { %535 = vmatprep.mubr.msk.f32.mxu0 %vm576_vm0, %v575_v0  ;;  %506 = vmatprep.subr.mxu1 %v575_v0  ;;  %v344_v61 = vld [vmem:[%s774_s7 + $0x20] sm:$0xff]  ;;  %v342_v63 = vld [vmem:[%s774_s7 + $0x10] sm:$0xff]  ;;  %v341_v1 = vld [vmem:[%s774_s7 + $0x8] sm:$0xff] }
   0xb   :  { %507 = vmatpush3.msra.mxu1 %v137_v9  ;;  %520 = vmatpush3.msra.mxu0 %v244_v32  ;;  %v340_v2 = vld [vmem:[%s774_s7] sm:$0xff] }
   0xc   :  { %508 = vmatprep.subr.mxu1 %v575_v0  ;;  %521 = vmatprep.subr.mxu0 %v575_v0  ;;  %v453_v3 = vld [vmem:[%s775_s6] ss:$0 sm:$0xff] }
   0xd   :  { %509 = vmatpush3.msra.mxu1 %v136_v10  ;;  %522 = vmatpush3.msra.mxu0 %v243_v33 }
   0xe   :  { %510 = vmatprep.subr.mxu1 %v575_v0  ;;  %523 = vmatprep.subr.mxu0 %v575_v0 }
   0xf   :  { %511 = vmatpush3.msra.mxu1 %v135_v11  ;;  %524 = vmatpush3.msra.mxu0 %v242_v34 }
  0x10   :  { %512 = vmatprep.subr.mxu1 %v575_v0  ;;  %525 = vmatprep.subr.mxu0 %v575_v0 }
  0x11   :  { %513 = vmatpush3.msra.mxu1 %v134_v12  ;;  %526 = vmatpush3.msra.mxu0 %v241_v35 }
  0x12   :  { %514 = vmatprep.subr.mxu1 %v575_v0  ;;  %527 = vmatprep.subr.mxu0 %v575_v0 }
  0x13   :  { %515 = vmatpush3.msra.mxu1 %v133_v13  ;;  %528 = vmatpush3.msra.mxu0 %v240_v36 }
  0x14   :  { %538 = vmatprep.subr.mxu1 %v575_v0  ;;  %529 = vmatprep.subr.mxu0 %v575_v0 }
  0x15   :  { %530 = vmatpush3.msra.mxu0 %v239_v37 }
  0x16   :  { %531 = vmatprep.subr.mxu0 %v575_v0 }
  0x17   :  { %532 = vmatpush3.msra.mxu0 %v238_v38 }
  0x18   :  { %533 = vmatprep.subr.mxu0 %v575_v0 }
  0x19   :  { %534 = vmatpush3.msra.mxu0 %v237_v39 }
  0xc9   :  { %v114_v15 = vpop.f32.mrf.mxu0 }
  0xca   :  { %v115_v16 = vadd.f32 %v449_v14, %v114_v15 }
  0xcb   :  { %v499_v17 = vpop.f32.mrf.mxu0 }
  0xcc   :  { %v119_v18 = vand.u32 2147483647, %v115_v16  ;;  %v118_v29 = vmax.f32 %v115_v16, 0.0 }
  0xce   :  { %v120_v19 = vsub.f32 0.0, %v119_v18 }
  0xd0   :  { %v121_v20 = vmul.f32 1.442695, %v120_v19 }
  0xd2   :  { %559 = vpow2.f32 %v121_v20  ;;  %v455_v20 = vld [vmem:[%s776_s8] ss:$0 sm:$0xff] }
  0xdf   :  { %v560_v21 = vpop.eup %559 }
  0xe0   :  { %v123_v22 = vadd.f32 1.0, %v560_v21  ;;  %v126_v23 = vmul.f32 -0.5, %v560_v21  ;;  %v129_v25 = vand.u32 2147483647, %v560_v21 }
  0xe2   :  { %561 = vlog2.f32 %v123_v22  ;;  %v127_v24 = vadd.f32 1.0, %v126_v23  ;;  %vm130_vm2 = vcmp.lt.f32.partialorder %v129_v25, 0.0004427343 }
  0xe4   :  { %v128_v28 = vmul.f32 %v560_v21, %v127_v24 }
  0xef   :  { %v562_v26 = vpop.eup %561 }
  0xf0   :  { %v125_v27 = vmul.f32 0.6931472, %v562_v26 }
  0xf2   :  { %v131_v30 = vsel %vm130_vm2, %v128_v28, %v125_v27 }
  0xf3   :  { %v132_v31 = vadd.f32 %v131_v30, %v118_v29 }
  0xf5   :  { %517 = vmatmul.mubr.msk.f32.vlgmr.msra.gmra.mxu1 %vm148_vm3, %v132_v31 }
  0xf6   :  { %554 = vmatprep.mubr.msk.f32.mxu1 %vm576_vm0, %v575_v0  ;;  %539 = vmatpush3.msra.mxu1 %v347_v58 }
  0xf7   :  { %540 = vmatprep.subr.mxu1 %v575_v0 }
  0xf8   :  { %541 = vmatpush3.msra.mxu1 %v346_v59 }
  0xf9   :  { %542 = vmatprep.subr.mxu1 %v575_v0 }
  0xfa   :  { %543 = vmatpush3.msra.mxu1 %v345_v60 }
  0xfb   :  { %544 = vmatprep.subr.mxu1 %v575_v0 }
  0xfc   :  { %545 = vmatpush3.msra.mxu1 %v344_v61 }
  0xfd   :  { %546 = vmatprep.subr.mxu1 %v575_v0 }
  0xfe   :  { %547 = vmatpush3.msra.mxu1 %v343_v62 }
  0xff   :  { %548 = vmatprep.subr.mxu1 %v575_v0 }
 0x100   :  { %549 = vmatpush3.msra.mxu1 %v342_v63 }
 0x101   :  { %550 = vmatprep.subr.mxu1 %v575_v0 }
 0x102   :  { %551 = vmatpush3.msra.mxu1 %v341_v1 }
 0x103   :  { %552 = vmatprep.subr.mxu1 %v575_v0 }
 0x104   :  { %553 = vmatpush3.msra.mxu1 %v340_v2 }
 0x1b5   :  { %v218_v41 = vpop.f32.mrf.mxu1 }
 0x1b6   :  { %v219_v42 = vadd.f32 %v451_v40, %v218_v41 }
 0x1b7   :  { %v518_v43 = vpop.f32.mrf.mxu1 }
 0x1b8   :  { %v223_v44 = vand.u32 2147483647, %v219_v42  ;;  %v222_v55 = vmax.f32 %v219_v42, 0.0 }
 0x1ba   :  { %v224_v45 = vsub.f32 0.0, %v223_v44 }
 0x1bc   :  { %v225_v46 = vmul.f32 1.442695, %v224_v45 }
 0x1be   :  { %563 = vpow2.f32 %v225_v46 }
 0x1cb   :  { %v564_v47 = vpop.eup %563 }
 0x1cc   :  { %v227_v48 = vadd.f32 1.0, %v564_v47  ;;  %v230_v49 = vmul.f32 -0.5, %v564_v47  ;;  %v233_v51 = vand.u32 2147483647, %v564_v47 }
 0x1ce   :  { %565 = vlog2.f32 %v227_v48  ;;  %v231_v50 = vadd.f32 1.0, %v230_v49  ;;  %vm234_vm4 = vcmp.lt.f32.partialorder %v233_v51, 0.0004427343 }
 0x1d0   :  { %v232_v54 = vmul.f32 %v564_v47, %v231_v50 }
 0x1db   :  { %v566_v52 = vpop.eup %565 }
 0x1dc   :  { %v229_v53 = vmul.f32 0.6931472, %v566_v52 }
 0x1de   :  { %v235_v56 = vsel %vm234_vm4, %v232_v54, %v229_v53 }
 0x1df   :  { %v236_v57 = vadd.f32 %v235_v56, %v222_v55 }
 0x1e1   :  { %536 = vmatmul.mubr.msk.f32.vlgmr.msra.gmra.mxu0 %vm148_vm3, %v236_v57 }
 0x2a1   :  { %v321_v4 = vpop.f32.mrf.mxu0 }
 0x2a2   :  { %v322_v5 = vadd.f32 %v453_v3, %v321_v4 }
 0x2a3   :  { %v537_v6 = vpop.f32.mrf.mxu0 }
 0x2a4   :  { %v326_v7 = vand.u32 2147483647, %v322_v5  ;;  %v325_v17 = vmax.f32 %v322_v5, 0.0 }
 0x2a6   :  { %v327_v8 = vsub.f32 0.0, %v326_v7 }
 0x2a8   :  { %v328_v9 = vmul.f32 1.442695, %v327_v8 }
 0x2aa   :  { %567 = vpow2.f32 %v328_v9 }
 0x2b7   :  { %v568_v10 = vpop.eup %567 }
 0x2b8   :  { %v330_v11 = vadd.f32 1.0, %v568_v10  ;;  %v333_v0 = vmul.f32 -0.5, %v568_v10  ;;  %v336_v13 = vand.u32 2147483647, %v568_v10 }
 0x2ba   :  { %569 = vlog2.f32 %v330_v11  ;;  %v334_v12 = vadd.f32 1.0, %v333_v0  ;;  %vm337_vm5 = vcmp.lt.f32.partialorder %v336_v13, 0.0004427343 }
 0x2bc   :  { %v335_v16 = vmul.f32 %v568_v10, %v334_v12 }
 0x2c7   :  { %v570_v14 = vpop.eup %569 }
 0x2c8   :  { %v332_v15 = vmul.f32 0.6931472, %v570_v14 }
 0x2ca   :  { %v338_v18 = vsel %vm337_vm5, %v335_v16, %v332_v15 }
 0x2cb   :  { %v339_v19 = vadd.f32 %v338_v18, %v325_v17 }
 0x2cd   :  { %555 = vmatmul.mubr.msk.f32.vlgmr.msra.gmra.mxu1 %vm148_vm3, %v339_v19 }
 0x38d   :  { %v424_v21 = vpop.f32.mrf.mxu1 }
 0x38e   :  { %v425_v22 = vadd.f32 %v455_v20, %v424_v21 }
 0x38f   :  { %v556_v23 = vpop.f32.mrf.mxu1 }
 0x390   :  { %v429_v24 = vand.u32 2147483647, %v425_v22  ;;  %v428_v35 = vmax.f32 %v425_v22, 0.0 }
 0x392   :  { %v430_v25 = vsub.f32 0.0, %v429_v24 }
 0x394   :  { %v431_v26 = vmul.f32 1.442695, %v430_v25 }
 0x396   :  { %571 = vpow2.f32 %v431_v26 }
 0x3a3   :  { %v572_v27 = vpop.eup %571 }
 0x3a4   :  { %v433_v28 = vadd.f32 1.0, %v572_v27  ;;  %v436_v29 = vmul.f32 -0.5, %v572_v27  ;;  %v439_v31 = vand.u32 2147483647, %v572_v27 }
 0x3a6   :  { %573 = vlog2.f32 %v433_v28  ;;  %v437_v30 = vadd.f32 1.0, %v436_v29  ;;  %vm440_vm6 = vcmp.lt.f32.partialorder %v439_v31, 0.0004427343 }
 0x3a8   :  { %v438_v34 = vmul.f32 %v572_v27, %v437_v30 }
 0x3b3   :  { %v574_v32 = vpop.eup %573 }
 0x3b4   :  { %v435_v33 = vmul.f32 0.6931472, %v574_v32 }
 0x3b6   :  { %v441_v36 = vsel %vm440_vm6, %v438_v34, %v435_v33 }
 0x3b7   :  { %v442_v37 = vadd.f32 %v441_v36, %v428_v35 }
 0x3b9   :  { %444 = vst.msk [vmem:[%s777_s9] sm:$0xff] %vm443_vm7, %v442_v37 }

</bundles_post_ra>
